<compile_context>
chip_gen: v6e
topology: v6e:2x2x1
jax: 0.10.0
libtpu: 0.0.40
codegen_flags: <defaults>
</compile_context>

<pallas_src>
import functools

import jax
import jax.numpy as jnp
from jax.experimental import pallas as pl
from jax.experimental.pallas import tpu as pltpu

NUM_VOCAB = 512      # vocabulary size (row 0 is the padding row)
EMB_DIM = 128        # lane-dense feature dim (multiple of the 128-lane vreg)
B, L = 2, 8          # batch, sequence length
DROPOUT_P = 0.2      # inference mode -> dropout is the identity


def _embedding_gather_kernel(ids_ref, table_ref, out_ref, buf, sems, *, n_tokens):
    """out[i, :] = table[ids[i], :] for all i, in a single grid step.

    ids_ref   : SMEM (n_tokens,) int32, scalar-prefetched token ids
    table_ref : HBM  (V, E) embedding table (never copied wholesale)
    out_ref   : VMEM (n_tokens, E) output block
    buf       : VMEM (n_tokens, E) scratch gather target
    sems      : (n_tokens,) DMA semaphores (one per in-flight row copy)
    """
    # Issue every row DMA first so they overlap, then wait on all of them.
    @pl.loop(0, n_tokens)
    def _issue(i):
        pltpu.make_async_copy(
            table_ref.at[pl.ds(ids_ref[i], 1), :],
            buf.at[pl.ds(i, 1), :],
            sems.at[i],
        ).start()

    @pl.loop(0, n_tokens)
    def _wait(i):
        pltpu.make_async_copy(
            table_ref.at[pl.ds(ids_ref[i], 1), :],
            buf.at[pl.ds(i, 1), :],
            sems.at[i],
        ).wait()

    # Single lane-dense store of the gathered slab into the pipelined output.
    out_ref[...] = buf[...]


def pallas_embedding_lookup(table, ids):
    """nn.Embedding(padding_idx=0) forward for int32 ids of shape (B, L)."""
    Bx, Lx = ids.shape
    V, E = table.shape
    n = Bx * Lx
    n_pad = max(8, -(-n // 8) * 8)                 # pad token count to a sublane multiple
    ids_flat = jnp.zeros((n_pad,), jnp.int32).at[:n].set(
        ids.reshape(-1).astype(jnp.int32))         # padded slots gather row 0 (zeros)

    out = pl.pallas_call(
        functools.partial(_embedding_gather_kernel, n_tokens=n_pad),
        grid_spec=pltpu.PrefetchScalarGridSpec(
            num_scalar_prefetch=1,
            grid=(1,),
            in_specs=[pl.BlockSpec(memory_space=pl.ANY)],          # table stays in HBM
            out_specs=pl.BlockSpec((n_pad, E), lambda i, ids_sref: (0, 0)),
            scratch_shapes=[
                pltpu.VMEM((n_pad, E), table.dtype),
                pltpu.SemaphoreType.DMA((n_pad,)),
            ],
        ),
        out_shape=jax.ShapeDtypeStruct((n_pad, E), table.dtype),
    )(ids_flat, table)
    return out[:n].reshape(Bx, Lx, E)


def embedding_forward(table, ids, dropout_p=DROPOUT_P, training=False):
    x = pallas_embedding_lookup(table, ids)
    # TODO(synk): training-mode dropout omitted (inference identity matches
    # F.dropout(x, p, training=False)); a training version would use
    # pltpu.prng_seed / pltpu.prng_random_bits to build the keep-mask in-kernel.
    del dropout_p, training
    return x


if __name__ == "__main__":
    key = jax.random.PRNGKey(0)
    k_emb, k_ids = jax.random.split(key)

    table = jax.random.normal(k_emb, (NUM_VOCAB, EMB_DIM), jnp.float32)
    table = table.at[0].set(0.0)                         # padding_idx = 0

    ids = jax.random.randint(k_ids, (B, L), 1, NUM_VOCAB, dtype=jnp.int32)
    lengths = jnp.array([L, 5], dtype=jnp.int32)
    valid = jnp.arange(L)[None, :] < lengths[:, None]
    ids = jnp.where(valid, ids, 0)                       # padded positions -> id 0

    out = embedding_forward(table, ids)
    out = jax.block_until_ready(out)

    ref = jnp.take(table, ids, axis=0)                   # XLA reference lookup
    assert out.shape == (B, L, EMB_DIM) and out.dtype == jnp.float32
    assert float(jnp.max(jnp.abs(out - ref))) == 0.0
    print("KERNEL_OK")
</pallas_src>

<mosaic_0001>
module attributes {stable_mosaic.version = 11 : i64} {
  func.func @_embedding_gather_kernel(%arg0: i32, %arg1: memref<16xi32, #tpu.memory_space<smem>>, %arg2: memref<512x128xf32, #tpu.memory_space<any>>, %arg3: memref<16x128xf32, #tpu.memory_space<vmem>>, %arg4: memref<16x128xf32, #tpu.memory_space<vmem>>, %arg5: memref<16x!tpu.dma_semaphore, #tpu.memory_space<semaphore_mem>>) attributes {dimension_semantics = [#tpu.dimension_semantics<arbitrary>], iteration_bounds = array<i64: 1>, scalar_prefetch = 1 : i64, scratch_operands = 2 : i64, tpu.core_type = #tpu.core_type<tc>, window_params = [{}, {pipeline_mode = #tpu.pipeline_mode<synchronous>, transform_indices = @transform_1, window_bounds = array<i64: 16, 128>}]} {
    %c0_i32 = arith.constant 0 : i32
    %c16_i32 = arith.constant 16 : i32
    %0 = arith.addi %c0_i32, %c16_i32 : i32
    %c1_i32 = arith.constant 1 : i32
    scf.for %arg6 = %c0_i32 to %0 step %c1_i32  : i32 {
      %c1_i32_8 = arith.constant 1 : i32
      %4 = arith.muli %arg6, %c1_i32_8 : i32
      %c0_i32_9 = arith.constant 0 : i32
      %5 = arith.addi %c0_i32_9, %4 : i32
      %6 = arith.index_cast %5 : i32 to index
      %7 = memref.load %arg1[%6] : memref<16xi32, #tpu.memory_space<smem>>
      %c0_i32_10 = arith.constant 0 : i32
      %8 = tpu.memref_slice %arg2[%7, %c0_i32_10] : memref<512x128xf32, #tpu.memory_space<any>> -> memref<1x128xf32, #tpu.memory_space<any>>
      %c0_i32_11 = arith.constant 0 : i32
      %9 = tpu.memref_slice %arg4[%5, %c0_i32_11] : memref<16x128xf32, #tpu.memory_space<vmem>> -> memref<1x128xf32, #tpu.memory_space<vmem>>
      %10 = tpu.memref_slice %arg5[%5] : memref<16x!tpu.dma_semaphore, #tpu.memory_space<semaphore_mem>> -> memref<1x!tpu.dma_semaphore, #tpu.memory_space<semaphore_mem>>
      %11 = tpu.memref_squeeze %10 : memref<1x!tpu.dma_semaphore, #tpu.memory_space<semaphore_mem>> -> memref<!tpu.dma_semaphore, #tpu.memory_space<semaphore_mem>>
      tpu.enqueue_dma source(%8 : memref<1x128xf32, #tpu.memory_space<any>>) target(%9 : memref<1x128xf32, #tpu.memory_space<vmem>>) target_semaphore(%11 : memref<!tpu.dma_semaphore, #tpu.memory_space<semaphore_mem>>)
    }
    %c16_i32_0 = arith.constant 16 : i32
    %c0_i32_1 = arith.constant 0 : i32
    %c16_i32_2 = arith.constant 16 : i32
    %1 = arith.addi %c0_i32_1, %c16_i32_2 : i32
    %c1_i32_3 = arith.constant 1 : i32
    scf.for %arg6 = %c0_i32_1 to %1 step %c1_i32_3  : i32 {
      %c1_i32_8 = arith.constant 1 : i32
      %4 = arith.muli %arg6, %c1_i32_8 : i32
      %c0_i32_9 = arith.constant 0 : i32
      %5 = arith.addi %c0_i32_9, %4 : i32
      %6 = arith.index_cast %5 : i32 to index
      %7 = memref.load %arg1[%6] : memref<16xi32, #tpu.memory_space<smem>>
      %c0_i32_10 = arith.constant 0 : i32
      %8 = tpu.memref_slice %arg2[%7, %c0_i32_10] : memref<512x128xf32, #tpu.memory_space<any>> -> memref<1x128xf32, #tpu.memory_space<any>>
      %c0_i32_11 = arith.constant 0 : i32
      %9 = tpu.memref_slice %arg4[%5, %c0_i32_11] : memref<16x128xf32, #tpu.memory_space<vmem>> -> memref<1x128xf32, #tpu.memory_space<vmem>>
      %10 = tpu.memref_slice %arg5[%5] : memref<16x!tpu.dma_semaphore, #tpu.memory_space<semaphore_mem>> -> memref<1x!tpu.dma_semaphore, #tpu.memory_space<semaphore_mem>>
      %11 = tpu.memref_squeeze %10 : memref<1x!tpu.dma_semaphore, #tpu.memory_space<semaphore_mem>> -> memref<!tpu.dma_semaphore, #tpu.memory_space<semaphore_mem>>
      tpu.wait_dma2 semaphore(%11 : memref<!tpu.dma_semaphore, #tpu.memory_space<semaphore_mem>>) src(%8 : memref<1x128xf32, #tpu.memory_space<any>>) dst(%9 : memref<1x128xf32, #tpu.memory_space<vmem>>)
    }
    %c16_i32_4 = arith.constant 16 : i32
    %c0 = arith.constant 0 : index
    %c0_5 = arith.constant 0 : index
    %2 = vector.load %arg4[%c0, %c0_5] : memref<16x128xf32, #tpu.memory_space<vmem>>, vector<16x128xf32>
    %c0_6 = arith.constant 0 : index
    %c0_7 = arith.constant 0 : index
    %3 = vector.load %arg3[%c0_6, %c0_7] : memref<16x128xf32, #tpu.memory_space<vmem>>, vector<16x128xf32>
    tpu.vector_store %arg3[%c0_6, %c0_7], %2 {strides = array<i32>} : memref<16x128xf32, #tpu.memory_space<vmem>>, vector<16x128xf32>,
    return
  }
  func.func @transform_1(%arg0: i32, %arg1: memref<16xi32, #tpu.memory_space<smem>>) -> (i32, i32) {
    %c0_i32 = arith.constant 0 : i32
    %c0_i32_0 = arith.constant 0 : i32
    %c0_i32_1 = arith.constant 0 : i32
    return %c0_i32, %c0_i32_0 : i32, i32
  }
}

</mosaic_0001>

<bundles_post_ra>
// kernel: tpu_custom_call.1
= control target key start
LH: loop header
LB: loop body
LE: loop exit
PB: predicated region body
PF: predicated region fallthrough
CT: control target
= control target key end

     0   :  { %s300_s9 = smov [#allocation5]   ;;  %s346_s0 = inlined_call_operand.hbm [shape: s32[16], index: 0, kind: input, shape index: {}]   ;;  %s347_s1 = inlined_call_operand.hbm [shape: f32[512,128], index: 1, kind: input, shape index: {}]   ;;  %s348_s2 = inlined_call_operand.hbm [shape: f32[16,128], index: 2, kind: output, shape index: {}]  }
   0x1   :  { %8 = dma.hbm_to_smem %s346_s0, 16, %s300_s9, [#allocation4] }
   0x2   :  { %286 = dma.done.wait [#allocation4], 16 }
   0x3   :  { %287 = vsyncadd [#allocation4], 4294967280 }
   0x4   :  { %10 = sfence }
   0x5   :  { %11 = vsyncpa [#allocation7], 0  ;;  %s323_s12 = smov 0  }
   0x6 LB: > { %s18_s13 = sld [smem:[#allocation5 + %s294_s12]]  ;;  %s21_s14 = scalar_lea.vmem [#allocation2], %s294_s12  ;;  %s294_s12 = sphi %s323_s12, %s17_s12  }
   0x7   : > { %s30_s15 = sshll.u32 %s21_s14, 4  ;;  %s22_s19 = scalar_lea.sflag [#allocation3], %s294_s12  ;;  %s31_s15 = int_to_ptr.vmem [resolvable:$true] %s30_s15 }
   0x8   : > { %s238_s23 = scalar_lea.hbm %s347_s1, 8192 }
   0xc   : > { %s191_s16 = sshll.u32 %s18_s13, 4 }
   0xd   : > { %s20_s18 = scalar_lea.hbm %s347_s1, %s191_s16 }
   0xe   : > { %s236_s20 = scalar_lea.hbm %s20_s18, 16  ;;  %p239_p1 = scmp.lt.s32.totalorder %s20_s18, %s347_s1 }
   0xf   : > { %p237_p0 = scmp.ne.s32.totalorder %s20_s18, %s236_s20  ;;  %p240_p2 = scmp.lt.s32.totalorder %s238_s23, %s236_s20 }
  0x11   : > { %p241_p3 = por %p240_p2, %p239_p1 }
  0x13   : > { %p242_p4 = pnand %p241_p3, %p237_p0 }
  0x15   : > { %245 = shalt.err (!%p242_p4)  }
  0x16   : > { %s246_s26 = scalar_lea.vmem %s31_s15, 16  ;;  %s301_s27 = smov [#allocation2]  }
  0x17   : > { %p247_p5 = scmp.ne.s32.totalorder %s31_s15, %s246_s26  ;;  %s248_s28 = sshll.u32 %s301_s27, 4  ;;  %s249_s28 = int_to_ptr.vmem [resolvable:$false] %s248_s28 }
  0x18   : > { %s250_s29 = scalar_lea.vmem %s249_s28, 256  ;;  %p251_p6 = scmp.lt.s32.totalorder %s31_s15, %s249_s28 }
  0x19   : > { %p252_p7 = scmp.lt.s32.totalorder %s250_s29, %s246_s26 }
  0x1b   : > { %p253_p8 = por %p252_p7, %p251_p6 }
  0x1d   : > { %p254_p9 = pnand %p253_p8, %p247_p5 }
  0x1f   : > { %257 = shalt.err (!%p254_p9)  }
  0x20   : > { %33 = dma.hbm_to_vmem [thread:$0]  %s20_s18, 16, %s31_s15, %s22_s19 }
  0x21   : > { %s17_s12 = sadd.s32 1, %s294_s12  }
  0x22   : > { %p14_p10 = scmp.ge.s32.totalorder %s17_s12, 16  }
  0x23   :  { %s296_s30 = smov (%p14_p10), 0  }
  0x24   :  { %16 = sbr.rel (!%p14_p10) target bundleno = 6 (0x6), region = 57 }
  0x29 LB: > { %s41_s3 = scalar_lea.sflag [#allocation3], %s298_s30  ;;  %s298_s30 = sphi %s296_s30, %s39_s30  }
  0x2a   : > { %288 = dma.done.wait %s41_s3, 16 }
  0x2b   : > { %289 = vsyncadd %s41_s3, 4294967280  ;;  %s39_s30 = sadd.s32 1, %s298_s30  }
  0x2c   : > { %p36_p11 = scmp.ge.s32.totalorder %s39_s30, 16  }
  0x2d   :  { %v45_v0 = vld [vmem:[#allocation2] sm:$0xff] (%p36_p11)  ;;  %v46_v1 = vld [vmem:[#allocation2 + $0x8] sm:$0xff] (%p36_p11)  ;;  %s302_s4 = smov (%p36_p11), [#allocation6]  }
  0x2e   :  { %38 = sbr.rel (!%p36_p11) target bundleno = 41 (0x29), region = 68  ;;  %47 = vst [vmem:[#allocation6] sm:$0xff] (%p36_p11), %v45_v0  ;;  %48 = vst [vmem:[#allocation6 + $0x8] sm:$0xff] (%p36_p11), %v46_v1  ;;  %s54_s5 = sshll.u32 (%p36_p11), %s302_s4, 4  ;;  %s55_s5 = int_to_ptr.vmem [resolvable:$true] %s54_s5 }
  0x2f   :  { %s258_s6 = scalar_lea.vmem (%p36_p11), %s55_s5, 256  ;;  %p263_p13 = scmp.lt.s32.totalorder (%p36_p11), %s55_s5, %s55_s5 }
  0x30   :  { %p259_p12 = scmp.ne.s32.totalorder (%p36_p11), %s55_s5, %s258_s6  ;;  %p264_p0 = scmp.lt.s32.totalorder (%p36_p11), %s258_s6, %s258_s6 }
  0x32   :  { %p265_p1 = por (%p36_p11), %p264_p0, %p263_p13 }
  0x34   :  { %p266_p2 = pnand %p265_p1, %p259_p12 }
  0x36   :  { %269 = shalt.err (!%p266_p2)
}
  0x37   :  { %s303_s1 = smov 128   ;;  %s304_s7 = smov 8  }
  0x38   :  { %60 = dma.vmem_to_hbm [thread:$0]  %s55_s5, 256, %s348_s2, [#allocation7], %s303_s1, %s303_s1, %s304_s7  }
  0x39   :  { %290 = dma.done.wait [#allocation7], 256  }
  0x3a   :  { %291 = vsyncadd [#allocation7], 4294967040 }
  0x3b   :  { %64 = vsyncpa [#allocation7], 1 }
  0x3c   :  { %65 = vsyncmov [#allocation3] }
  0x3f   :  { %s66_s10 = vpop.sfrf %65 }
  0x40   :  { %p192_p3 = scmp.ne.s32.totalorder %s66_s10, 0 }
  0x42   :  { %70 = shalt.err (%p192_p3)  }
  0x43   :  { %72 = vsyncmov [#allocation3 + $0x1] }
  0x46   :  { %s73_s11 = vpop.sfrf %72 }
  0x47   :  { %p193_p4 = scmp.ne.s32.totalorder %s73_s11, 0 }
  0x49   :  { %77 = shalt.err (%p193_p4)  }
  0x4a   :  { %79 = vsyncmov [#allocation3 + $0x2] }
  0x4d   :  { %s80_s12 = vpop.sfrf %79 }
  0x4e   :  { %p194_p5 = scmp.ne.s32.totalorder %s80_s12, 0 }
  0x50   :  { %84 = shalt.err (%p194_p5)  }
  0x51   :  { %86 = vsyncmov [#allocation3 + $0x3] }
  0x54   :  { %s87_s13 = vpop.sfrf %86 }
  0x55   :  { %p195_p6 = scmp.ne.s32.totalorder %s87_s13, 0 }
  0x57   :  { %91 = shalt.err (%p195_p6)  }
  0x58   :  { %93 = vsyncmov [#allocation3 + $0x4] }
  0x5b   :  { %s94_s2 = vpop.sfrf %93 }
  0x5c   :  { %p196_p7 = scmp.ne.s32.totalorder %s94_s2, 0 }
  0x5e   :  { %98 = shalt.err (%p196_p7)  }
  0x5f   :  { %100 = vsyncmov [#allocation3 + $0x5] }
  0x62   :  { %s101_s14 = vpop.sfrf %100 }
  0x63   :  { %p197_p8 = scmp.ne.s32.totalorder %s101_s14, 0 }
  0x65   :  { %105 = shalt.err (%p197_p8)  }
  0x66   :  { %107 = vsyncmov [#allocation3 + $0x6] }
  0x69   :  { %s108_s15 = vpop.sfrf %107 }
  0x6a   :  { %p198_p9 = scmp.ne.s32.totalorder %s108_s15, 0 }
  0x6c   :  { %112 = shalt.err (%p198_p9)  }
  0x6d   :  { %114 = vsyncmov [#allocation3 + $0x7] }
  0x70   :  { %s115_s16 = vpop.sfrf %114 }
  0x71   :  { %p199_p10 = scmp.ne.s32.totalorder %s115_s16, 0 }
  0x73   :  { %119 = shalt.err (%p199_p10)  }
  0x74   :  { %121 = vsyncmov [#allocation3 + $0x8] }
  0x77   :  { %s122_s0 = vpop.sfrf %121 }
  0x78   :  { %p200_p11 = scmp.ne.s32.totalorder %s122_s0, 0 }
  0x7a   :  { %126 = shalt.err (%p200_p11)  }
  0x7b   :  { %128 = vsyncmov [#allocation3 + $0x9] }
  0x7e   :  { %s129_s17 = vpop.sfrf %128 }
  0x7f   :  { %p201_p12 = scmp.ne.s32.totalorder %s129_s17, 0 }
  0x81   :  { %133 = shalt.err (%p201_p12)  }
  0x82   :  { %135 = vsyncmov [#allocation3 + $0xa] }
  0x85   :  { %s136_s18 = vpop.sfrf %135 }
  0x86   :  { %p202_p13 = scmp.ne.s32.totalorder %s136_s18, 0 }
  0x88   :  { %140 = shalt.err (%p202_p13)  }
  0x89   :  { %142 = vsyncmov [#allocation3 + $0xb] }
  0x8c   :  { %s143_s19 = vpop.sfrf %142 }
  0x8d   :  { %p203_p0 = scmp.ne.s32.totalorder %s143_s19, 0 }
  0x8f   :  { %147 = shalt.err (%p203_p0)  }
  0x90   :  { %149 = vsyncmov [#allocation3 + $0xc] }
  0x93   :  { %s150_s20 = vpop.sfrf %149 }
  0x94   :  { %p204_p1 = scmp.ne.s32.totalorder %s150_s20, 0 }
  0x96   :  { %154 = shalt.err (%p204_p1)  }
  0x97   :  { %156 = vsyncmov [#allocation3 + $0xd] }
  0x9a   :  { %s157_s21 = vpop.sfrf %156 }
  0x9b   :  { %p205_p2 = scmp.ne.s32.totalorder %s157_s21, 0 }
  0x9d   :  { %161 = shalt.err (%p205_p2)  }
  0x9e   :  { %163 = vsyncmov [#allocation3 + $0xe] }
  0xa1   :  { %s164_s22 = vpop.sfrf %163 }
  0xa2   :  { %p206_p3 = scmp.ne.s32.totalorder %s164_s22, 0 }
  0xa4   :  { %168 = shalt.err (%p206_p3)  }
  0xa5   :  { %170 = vsyncmov [#allocation3 + $0xf] }
  0xa8   :  { %s171_s23 = vpop.sfrf %170 }
  0xa9   :  { %p207_p4 = scmp.ne.s32.totalorder %s171_s23, 0 }
  0xab   :  { %175 = shalt.err (%p207_p4)  }

</bundles_post_ra>
